<compile_context>
chip_gen: v7x
topology: tpu7x:2x2x1
jax: 0.10.0
libtpu: 0.0.40
codegen_flags: <defaults>
</compile_context>

<pallas_src>
import jax
import jax.numpy as jnp
from jax.experimental import pallas as pl
from jax.experimental.pallas import tpu as pltpu

WORLD_SIZE = 1  # single process -> dist.get_world_size() == 1


# ---------------------------------------------------------------------------
# helpers
# ---------------------------------------------------------------------------
def _round_up(x, m):
    return ((x + m - 1) // m) * m


def _tpu_vmem_and_kind():
    """Physical VMEM per core + device kind, with chip-aware fallbacks."""
    kind = ""
    try:
        kind = jax.devices()[0].device_kind.lower()
    except Exception:
        pass
    vmem = None
    try:
        vmem = int(pltpu.get_tpu_info().vmem_capacity_bytes)
    except Exception:
        vmem = None
    if vmem is None:
        # Only v7x-class parts (64 MiB/TC) get the conservative default;
        # v5e/v6e keep their full 128 MiB budget.
        vmem = (64 << 20) if ("7" in kind) else (128 << 20)
    return vmem, kind


def _default_tile_sizes():
    """(tm, ti, vmem_capacity) defaults per chip generation."""
    vmem, kind = _tpu_vmem_and_kind()
    if vmem <= (64 << 20) or "7" in kind:
        # v7x: ~310 flops/byte balance, but only 64 MiB VMEM/TC -> shrink ti.
        return 512, 256, vmem
    if "v5" in kind:
        # v5e: ~240 flops/byte balance; tm=256 is near roofline, spend VMEM on ti.
        return 256, 512, vmem
    # v6e (and unknown 128 MiB parts): ~650 flops/byte balance -> large token tile.
    return 768, 512, vmem


# ---------------------------------------------------------------------------
# Pallas kernels: fused LlamaMLP with I-tiled reduction
#   grid = (M // tm, nk)   (token tiles "parallel", intermediate tiles "arbitrary")
#   x_ref   : (tm, H)        input activations (cast to compute dtype per tile)
#   wgu_ref : (1, H, 2*ti)   [gate tile | up tile] columns for intermediate tile k
#   wd_ref  : (1, ti, H)     down_proj rows for intermediate tile k
#   o_ref   : (tm, H)        output (f32: accumulated in place; else via f32 scratch)
# ---------------------------------------------------------------------------
def _make_fused_mlp_kernel(compute_dtype, acc_in_out):
    if acc_in_out:
        # Output dtype is f32: the output block index depends only on the token-tile
        # axis, so it stays resident across the k axis and doubles as the accumulator.
        def kernel(x_ref, wgu_ref, wd_ref, o_ref):
            k = pl.program_id(1)

            @pl.when(k == 0)
            def _():
                o_ref[...] = jnp.zeros_like(o_ref)

            x = x_ref[...].astype(compute_dtype)          # per-tile cast (no wrapper pass)
            wgu = wgu_ref[0]                               # (H, 2*ti)
            wd = wd_ref[0]                                 # (ti, H)
            ti = wd.shape[0]

            gu = jnp.dot(x, wgu, preferred_element_type=jnp.float32)  # (tm, 2*ti)
            g = gu[:, :ti]                                 # ti is 128-aligned -> clean split
            u = gu[:, ti:]
            h = (g * jax.nn.sigmoid(g)) * u                # SiLU gating in f32

            o_ref[...] += jnp.dot(h.astype(compute_dtype), wd,
                                  preferred_element_type=jnp.float32)
        return kernel

    def kernel(x_ref, wgu_ref, wd_ref, o_ref, acc_ref):
        k = pl.program_id(1)

        @pl.when(k == 0)
        def _():
            acc_ref[...] = jnp.zeros_like(acc_ref)

        x = x_ref[...].astype(compute_dtype)
        wgu = wgu_ref[0]
        wd = wd_ref[0]
        ti = wd.shape[0]

        gu = jnp.dot(x, wgu, preferred_element_type=jnp.float32)
        g = gu[:, :ti]
        u = gu[:, ti:]
        h = (g * jax.nn.sigmoid(g)) * u

        acc_ref[...] += jnp.dot(h.astype(compute_dtype), wd,
                                preferred_element_type=jnp.float32)

        @pl.when(k == pl.num_programs(1) - 1)
        def _():
            o_ref[...] = acc_ref[...].astype(o_ref.dtype)
    return kernel


def llama_mlp_pallas(x_tokens, w_gu3, w_down3, *, tm=None):
    """x_tokens: [M, H]; w_gu3: [nk, H, 2*ti]; w_down3: [nk, ti, H]. Returns [M, H]."""
    M, H = x_tokens.shape
    nk, Hw, ti2 = w_gu3.shape
    assert Hw == H
    ti = ti2 // 2
    I_pad = nk * ti

    tm_default, _, vmem_cap = _default_tile_sizes()
    if tm is None:
        tm = tm_default

    compute_dtype = w_gu3.dtype
    out_dtype = x_tokens.dtype
    acc_in_out = jnp.dtype(out_dtype) == jnp.float32   # f32 out -> accumulate in place

    a_item = jnp.dtype(x_tokens.dtype).itemsize
    o_item = jnp.dtype(out_dtype).itemsize
    w_item = jnp.dtype(compute_dtype).itemsize

    # bf16 packs two rows per sublane: round small-M tiles to 16 rows, else 8.
    row_align = 16 if jnp.dtype(compute_dtype) == jnp.bfloat16 else 8
    tm_eff = min(tm, _round_up(M, row_align))
    tm_eff = max(row_align, _round_up(tm_eff, row_align))

    def tile_bytes(tmv):
        b = 2 * tmv * H * a_item            # x tile, double-buffered
        b += 2 * tmv * H * o_item           # out tile, double-buffered
        b += 2 * H * 2 * ti * w_item        # gate+up weight tile, double-buffered
        b += 2 * ti * H * w_item            # down weight tile, double-buffered
        if not acc_in_out:
            b += tmv * H * 4                # f32 accumulator scratch
        return b

    # Guard: shrink tm until the working set fits ~75% of this chip's VMEM
    # (a (tm, ti) pair that fits v6e's 128 MiB can exceed v7x's 64 MiB/TC).
    budget = int(0.75 * vmem_cap)
    while tile_bytes(tm_eff) > budget and tm_eff > row_align:
        tm_eff = max(row_align, _round_up(tm_eff // 2, row_align))
    # TODO(synk): if even the minimal tm overflows, ti (baked into the weight layout)
    # would have to be re-tiled at prepare time.

    M_pad = _round_up(M, tm_eff)
    if M_pad != M:
        x_tokens = jnp.pad(x_tokens, ((0, M_pad - M), (0, 0)))

    grid = (M_pad // tm_eff, nk)
    # TODO(synk): for decode-sized M on v7x (grid[0]==1) split the nk reduction across the
    # two TensorCores (CORE_PARALLEL + per-core partial accumulators + final add).

    cost = pl.CostEstimate(
        flops=6 * M_pad * H * I_pad,                      # fused GEMMs: 4MHI + 2MIH
        transcendentals=M_pad * I_pad,                    # sigmoid
        bytes_accessed=(M_pad * H * (a_item + o_item)
                        + grid[0] * (w_gu3.size + w_down3.size) * w_item),
    )

    kernel = _make_fused_mlp_kernel(compute_dtype, acc_in_out)
    scratch = [] if acc_in_out else [pltpu.VMEM((tm_eff, H), jnp.float32)]

    vmem_limit = int(min(vmem_cap, max(tile_bytes(tm_eff) + (8 << 20), 32 << 20)))

    out = pl.pallas_call(
        kernel,
        out_shape=jax.ShapeDtypeStruct((M_pad, H), out_dtype),
        grid_spec=pltpu.PrefetchScalarGridSpec(
            num_scalar_prefetch=0,
            grid=grid,
            in_specs=[
                pl.BlockSpec((tm_eff, H), lambda i, k: (i, 0)),        # tokens
                pl.BlockSpec((1, H, 2 * ti), lambda i, k: (k, 0, 0)),  # gate+up tile k
                pl.BlockSpec((1, ti, H), lambda i, k: (k, 0, 0)),      # down tile k
            ],
            out_specs=pl.BlockSpec((tm_eff, H), lambda i, k: (i, 0)),
            scratch_shapes=scratch,
        ),
        compiler_params=pltpu.CompilerParams(
            dimension_semantics=("parallel", "arbitrary"),
            vmem_limit_bytes=vmem_limit,
        ),
        cost_estimate=cost,
    )(x_tokens, w_gu3, w_down3)

    return out[:M] if M_pad != M else out


# ---------------------------------------------------------------------------
# Init-time parameter preparation (done ONCE, not per forward call)
# ---------------------------------------------------------------------------
def prepare_llama_mlp_params(torch_params, *, ti=None, dtype=None):
    """Convert PyTorch nn.Linear layout ([out, in]) LlamaMLP weights into the kernel's
    fused, pre-transposed, I-tiled layout. The 1-way TP split (world_size==1) is a no-op.

    I is zero-padded up to a multiple of a 128-aligned ti (padded gate/up columns and
    down rows are zeros, so the output is unchanged).
    """
    w_gate = jnp.asarray(torch_params["gate"]).T   # [H, I]
    w_up = jnp.asarray(torch_params["up"]).T       # [H, I]
    w_down = jnp.asarray(torch_params["down"]).T   # [I, H]
    if dtype is not None:
        w_gate, w_up, w_down = (w.astype(dtype) for w in (w_gate, w_up, w_down))

    H, I = w_gate.shape

    if ti is None:
        _, ti_target, _ = _default_tile_sizes()    # 512 on v5e/v6e, 256 on v7x
    else:
        ti_target = ti
    ti_eff = min(ti_target, _round_up(I, 128))     # don't over-tile tiny I
    ti_eff = max(128, _round_up(ti_eff, 128))      # always 128-lane aligned

    I_pad = _round_up(I, ti_eff)
    if I_pad != I:
        pad = I_pad - I
        w_gate = jnp.pad(w_gate, ((0, 0), (0, pad)))
        w_up = jnp.pad(w_up, ((0, 0), (0, pad)))
        w_down = jnp.pad(w_down, ((0, pad), (0, 0)))
    nk = I_pad // ti_eff

    # [nk, H, 2*ti]: tile k holds gate columns [k*ti,(k+1)*ti) then up columns of same range.
    w_gu3 = jnp.concatenate(
        [w_gate.reshape(H, nk, ti_eff), w_up.reshape(H, nk, ti_eff)], axis=-1
    ).transpose(1, 0, 2)
    # [nk, ti, H]: matching down_proj row tiles.
    w_down3 = w_down.reshape(nk, ti_eff, H)

    return {"w_gu": w_gu3, "w_down": w_down3}


# ---------------------------------------------------------------------------
# SequenceWarpper / TpSequenceParallel glue (world_size == 1)
# ---------------------------------------------------------------------------
def _gather_along_seq(x, world_size=WORLD_SIZE):
    # torch: _all_gather_base along dim 1; identity when world_size == 1.
    # TODO(synk): multi-chip version would use pltpu.make_async_remote_copy ring all-gather.
    return x


def _reduce_scatter_along_seq(x, world_size=WORLD_SIZE):
    # torch: _reduce_scatter_base along dim 1; identity when world_size == 1.
    return x


def tp_sequence_parallel_forward(x, prepared):
    """Forward of TpSequenceParallel wrapping SequenceWarpper(LlamaMLP), world_size == 1.

    x: [B, S, H]; prepared: output of prepare_llama_mlp_params (weights already fused,
    transposed and I-tiled at init). Activation dtype casting happens per-tile inside
    the kernel, not here.
    """
    B, S, H = x.shape
    xg = _gather_along_seq(x)                                # identity (1-way gather)
    y = llama_mlp_pallas(xg.reshape(B * S, H),
                         prepared["w_gu"], prepared["w_down"])
    y = y.reshape(B, S, H).astype(x.dtype)
    return _reduce_scatter_along_seq(y)                      # identity (1-way RS)


# ---------------------------------------------------------------------------
if __name__ == "__main__":
    B, S, H, I = 2, 8, 32, 64   # batch, seq, hidden, intermediate
    key = jax.random.PRNGKey(0)
    kx, kg, ku, kd = jax.random.split(key, 4)

    x = jax.random.normal(kx, (B, S, H), dtype=jnp.float32)
    # Deterministic LlamaMLP parameters in PyTorch nn.Linear layout [out_features, in_features]
    torch_params = {
        "gate": jax.random.normal(kg, (I, H), dtype=jnp.float32) * 0.05,
        "up":   jax.random.normal(ku, (I, H), dtype=jnp.float32) * 0.05,
        "down": jax.random.normal(kd, (H, I), dtype=jnp.float32) * 0.05,
    }

    prepared = prepare_llama_mlp_params(torch_params)        # once, at module init

    fwd = jax.jit(tp_sequence_parallel_forward)
    out = jax.block_until_ready(fwd(x, prepared))

    # Pure-JAX reference for the same forward (LlamaMLP with identity collectives)
    g = x @ torch_params["gate"].T
    u = x @ torch_params["up"].T
    ref = ((g * jax.nn.sigmoid(g)) * u) @ torch_params["down"].T

    assert out.shape == (B, S, H), out.shape
    err = float(jnp.max(jnp.abs(out - ref)))
    assert jnp.allclose(out, ref, atol=2e-3, rtol=2e-3), err
    print("KERNEL_OK")
</pallas_src>

<mosaic_0001>
module attributes {stable_mosaic.version = 11 : i64} {
  func.func @kernel(%arg0: i32, %arg1: i32, %arg2: memref<16x32xf32, #tpu.memory_space<vmem>>, %arg3: memref<1x32x256xf32, #tpu.memory_space<vmem>>, %arg4: memref<1x128x32xf32, #tpu.memory_space<vmem>>, %arg5: memref<16x32xf32, #tpu.memory_space<vmem>>) attributes {dimension_semantics = [#tpu.dimension_semantics<parallel>, #tpu.dimension_semantics<arbitrary>], iteration_bounds = array<i64: 1, 1>, scalar_prefetch = 0 : i64, scratch_operands = 0 : i64, tpu.core_type = #tpu.core_type<tc>, window_params = [{transform_indices = @transform_0, window_bounds = array<i64: 16, 32>}, {transform_indices = @transform_1, window_bounds = array<i64: 1, 32, 256>}, {transform_indices = @transform_2, window_bounds = array<i64: 1, 128, 32>}, {transform_indices = @transform_3, window_bounds = array<i64: 16, 32>}]} {
    %c0_i32 = arith.constant 0 : i32
    %0 = arith.cmpi eq, %arg1, %c0_i32 : i32
    %1 = arith.extui %0 : i1 to i32
    %c0_i32_0 = arith.constant 0 : i32
    %2 = arith.cmpi ne, %1, %c0_i32_0 : i32
    scf.if %2 {
      %cst_14 = arith.constant 0.000000e+00 : f32
      %22 = vector.broadcast %cst_14 : f32 to vector<16x32xf32>
      %c0_15 = arith.constant 0 : index
      %c0_16 = arith.constant 0 : index
      %23 = vector.load %arg5[%c0_15, %c0_16] : memref<16x32xf32, #tpu.memory_space<vmem>>, vector<16x32xf32>
      tpu.vector_store %arg5[%c0_15, %c0_16], %22 {strides = array<i32>} : memref<16x32xf32, #tpu.memory_space<vmem>>, vector<16x32xf32>,
    } else {
    }
    %c0 = arith.constant 0 : index
    %c0_1 = arith.constant 0 : index
    %3 = vector.load %arg2[%c0, %c0_1] : memref<16x32xf32, #tpu.memory_space<vmem>>, vector<16x32xf32>
    %c0_2 = arith.constant 0 : index
    %c0_3 = arith.constant 0 : index
    %c0_4 = arith.constant 0 : index
    %4 = vector.load %arg3[%c0_2, %c0_3, %c0_4] : memref<1x32x256xf32, #tpu.memory_space<vmem>>, vector<1x32x256xf32>
    %5 = vector.shape_cast %4 : vector<1x32x256xf32> to vector<32x256xf32>
    %c0_5 = arith.constant 0 : index
    %c0_6 = arith.constant 0 : index
    %c0_7 = arith.constant 0 : index
    %6 = vector.load %arg4[%c0_5, %c0_6, %c0_7] : memref<1x128x32xf32, #tpu.memory_space<vmem>>, vector<1x128x32xf32>
    %7 = vector.shape_cast %6 : vector<1x128x32xf32> to vector<128x32xf32>
    %cst = arith.constant dense<0.000000e+00> : vector<16x256xf32>
    %8 = tpu.matmul %3, %5, %cst {dimension_numbers = #tpu.dot_dimension_numbers<[1], [0], [0], [1], [0, 0, 1, 1], [], []>} : vector<16x32xf32>, vector<32x256xf32>, vector<16x256xf32> -> vector<16x256xf32>
    %9 = vector.extract_strided_slice %8 {offsets = [0, 0], sizes = [16, 128], strides = [1, 1]} : vector<16x256xf32> to vector<16x128xf32>
    %10 = vector.extract_strided_slice %8 {offsets = [0, 128], sizes = [16, 128], strides = [1, 1]} : vector<16x256xf32> to vector<16x128xf32>
    %11 = arith.negf %9 : vector<16x128xf32>
    %12 = math.exp %11 : vector<16x128xf32>
    %cst_8 = arith.constant 1.000000e+00 : f32
    %13 = vector.broadcast %cst_8 : f32 to vector<16x128xf32>
    %14 = arith.addf %13, %12 : vector<16x128xf32>
    %15 = arith.divf %13, %14 : vector<16x128xf32>
    %16 = arith.mulf %9, %15 : vector<16x128xf32>
    %17 = arith.mulf %16, %10 : vector<16x128xf32>
    %c0_9 = arith.constant 0 : index
    %c0_10 = arith.constant 0 : index
    %18 = vector.load %arg5[%c0_9, %c0_10] : memref<16x32xf32, #tpu.memory_space<vmem>>, vector<16x32xf32>
    %cst_11 = arith.constant dense<0.000000e+00> : vector<16x32xf32>
    %19 = tpu.matmul %17, %7, %cst_11 {dimension_numbers = #tpu.dot_dimension_numbers<[1], [0], [0], [1], [0, 0, 1, 1], [], []>} : vector<16x128xf32>, vector<128x32xf32>, vector<16x32xf32> -> vector<16x32xf32>
    %20 = arith.addf %18, %19 : vector<16x32xf32>
    %c0_12 = arith.constant 0 : index
    %c0_13 = arith.constant 0 : index
    %21 = vector.load %arg5[%c0_12, %c0_13] : memref<16x32xf32, #tpu.memory_space<vmem>>, vector<16x32xf32>
    tpu.vector_store %arg5[%c0_12, %c0_13], %20 {strides = array<i32>} : memref<16x32xf32, #tpu.memory_space<vmem>>, vector<16x32xf32>,
    return
  }
  func.func @transform_0(%arg0: i32, %arg1: i32) -> (i32, i32) {
    %c0_i32 = arith.constant 0 : i32
    %c0_i32_0 = arith.constant 0 : i32
    return %arg0, %c0_i32 : i32, i32
  }
  func.func @transform_1(%arg0: i32, %arg1: i32) -> (i32, i32, i32) {
    %c0_i32 = arith.constant 0 : i32
    %c0_i32_0 = arith.constant 0 : i32
    %c0_i32_1 = arith.constant 0 : i32
    return %arg1, %c0_i32, %c0_i32_0 : i32, i32, i32
  }
  func.func @transform_2(%arg0: i32, %arg1: i32) -> (i32, i32, i32) {
    %c0_i32 = arith.constant 0 : i32
    %c0_i32_0 = arith.constant 0 : i32
    %c0_i32_1 = arith.constant 0 : i32
    return %arg1, %c0_i32, %c0_i32_0 : i32, i32, i32
  }
  func.func @transform_3(%arg0: i32, %arg1: i32) -> (i32, i32) {
    %c0_i32 = arith.constant 0 : i32
    %c0_i32_0 = arith.constant 0 : i32
    return %arg0, %c0_i32 : i32, i32
  }
}

</mosaic_0001>

<bundles_post_ra>
// kernel: tp_sequence_parallel_forward.1
= control target key start
LH: loop header
LB: loop body
LE: loop exit
PB: predicated region body
PF: predicated region fallthrough
CT: control target
= control target key end

     0   :  { %vm19_vm0 = vcmask 261120   ;;  %v378_v7 = vmov 0.0   ;;  %s498_s0 = inlined_call_operand.vmem [shape: f32[16,32], index: 0, kind: input, shape index: {}]   ;;  %s499_s1 = inlined_call_operand.vmem [shape: f32[1,32,256], index: 1, kind: input, shape index: {}]   ;;  %s500_s2 = inlined_call_operand.vmem [shape: f32[1,128,32], index: 2, kind: input, shape index: {}]   ;;  %s501_s3 = inlined_call_operand.hbm [shape: f32[16,32], index: 3, kind: output, shape index: {}]  }
   0x1   :  { %v25_v0 = vld [vmem:[%s499_s1 + $0x8] sm:$0xff]  ;;  %v27_v1 = vld [vmem:[%s499_s1 + $0x18] sm:$0xff]  ;;  %v24_v2 = vld [vmem:[%s499_s1] sm:$0xff]  ;;  %20 = vst.msk [vmem:[#allocation2] sm:$0xff] %vm19_vm0, %v378_v7  ;;  %119 = vmatprep.mubr.f32.mxu0 %v378_v7 }
   0x2   :  { %v302_v3 = vpack.c.bf16 %v27_v1, %v25_v0  ;;  %v26_v4 = vld [vmem:[%s499_s1 + $0x10] sm:$0xff]  ;;  %v29_v5 = vld [vmem:[%s499_s1 + $0x28] sm:$0xff]  ;;  %v31_v6 = vld [vmem:[%s499_s1 + $0x38] sm:$0xff]  ;;  %21 = vst.msk [vmem:[#allocation2 + $0x8] sm:$0xff] %vm19_vm0, %v378_v7 }
   0x3   :  { %v304_v8 = vpack.c.bf16 %v26_v4, %v24_v2  ;;  %v306_v9 = vpack.c.bf16 %v31_v6, %v29_v5  ;;  %v28_v10 = vld [vmem:[%s499_s1 + $0x20] sm:$0xff]  ;;  %v30_v11 = vld [vmem:[%s499_s1 + $0x30] sm:$0xff] }
   0x4   :  { %303 = vmatprep.subr.bf16.mxu0 %v302_v3 }
   0x5   :  { %8 = vsyncpa [#allocation3], 0  ;;  %305 = vmatpush1.bf16.msra.mxu0 %v304_v8  ;;  %v308_v12 = vpack.c.bf16 %v30_v11, %v28_v10  ;;  %v22_v13 = vld [vmem:[%s498_s0] sm:$0xff]  ;;  %v23_v14 = vld [vmem:[%s498_s0 + $0x8] sm:$0xff] }
   0x6   :  { %307 = vmatprep.subr.bf16.mxu0 %v306_v9  ;;  %v32_v15 = vld [vmem:[%s500_s2] sm:$0xff]  ;;  %v33_v16 = vld [vmem:[%s500_s2 + $0x8] sm:$0xff]  ;;  %v34_v18 = vld [vmem:[%s500_s2 + $0x10] sm:$0xff] }
   0x7   :  { %v310_v17 = vpack.c.bf16 %v33_v16, %v32_v15  ;;  %v35_v19 = vld [vmem:[%s500_s2 + $0x18] sm:$0xff]  ;;  %v36_v21 = vld [vmem:[%s500_s2 + $0x20] sm:$0xff]  ;;  %v37_v22 = vld [vmem:[%s500_s2 + $0x28] sm:$0xff] }
   0x8   :  { %v314_v20 = vpack.c.bf16 %v35_v19, %v34_v18  ;;  %v318_v23 = vpack.c.bf16 %v37_v22, %v36_v21  ;;  %v38_v24 = vld [vmem:[%s500_s2 + $0x30] sm:$0xff]  ;;  %v39_v25 = vld [vmem:[%s500_s2 + $0x38] sm:$0xff]  ;;  %v40_v27 = vld [vmem:[%s500_s2 + $0x40] sm:$0xff] }
   0x9   :  { %309 = vmatpush1.bf16.msra.mxu0 %v308_v12  ;;  %311 = vmatprep.subr.bf16.mxu1 %v310_v17  ;;  %v322_v26 = vpack.c.bf16 %v39_v25, %v38_v24  ;;  %v41_v28 = vld [vmem:[%s500_s2 + $0x48] sm:$0xff]  ;;  %v42_v30 = vld [vmem:[%s500_s2 + $0x50] sm:$0xff]  ;;  %v43_v31 = vld [vmem:[%s500_s2 + $0x58] sm:$0xff] }
   0xa   :  { %313 = vmatpush3.bf16.msra.mxu1 %v310_v17  ;;  %v326_v29 = vpack.c.bf16 %v41_v28, %v40_v27  ;;  %v330_v32 = vpack.c.bf16 %v43_v31, %v42_v30  ;;  %v44_v33 = vld [vmem:[%s500_s2 + $0x60] sm:$0xff]  ;;  %v45_v34 = vld [vmem:[%s500_s2 + $0x68] sm:$0xff]  ;;  %v46_v36 = vld [vmem:[%s500_s2 + $0x70] sm:$0xff] }
   0xb   :  { %315 = vmatprep.subr.bf16.mxu1 %v314_v20  ;;  %v334_v35 = vpack.c.bf16 %v45_v34, %v44_v33  ;;  %v47_v37 = vld [vmem:[%s500_s2 + $0x78] sm:$0xff]  ;;  %v149_v55 = vld [vmem:[#allocation2 + $0x8] sm:$0xff]  ;;  %s379_s2 = smov [#allocation2]   ;;  %v148_v56 = vld [vmem:[#allocation2] sm:$0xff] }
   0xc   :  { %245 = vmatmul.mubr.msk.f32.vlgmr.msra.gmra.mrb[0].mxu0 %vm19_vm0, %v22_v13  ;;  %v338_v38 = vpack.c.bf16 %v47_v37, %v46_v36  ;;  %s234_s7 = sshll.u32 %s379_s2, 4  ;;  %s235_s7 = int_to_ptr.vmem [resolvable:$true] %s234_s7 }
   0xd   :  { %125 = vmatprep.mubr.f32.mxu0 %v378_v7  ;;  %s354_s8 = scalar_lea.vmem %s235_s7, 256  ;;  %p359_p1 = scmp.lt.s32.totalorder %s235_s7, %s235_s7 }
   0xe   :  { %317 = vmatpush3.bf16.msra.mxu1 %v314_v20  ;;  %p355_p0 = scmp.ne.s32.totalorder %s235_s7, %s354_s8  ;;  %p360_p2 = scmp.lt.s32.totalorder %s354_s8, %s354_s8 }
   0xf   :  { %319 = vmatprep.subr.bf16.mxu1 %v318_v23 }
  0x10   :  { %246 = vmatmul.mubr.msk.f32.gmra.mrb[2].mxu0 %vm19_vm0, %v23_v14  ;;  %p361_p3 = por %p360_p2, %p359_p1 }
  0x12   :  { %321 = vmatpush3.bf16.msra.mxu1 %v318_v23  ;;  %p362_p4 = pnand %p361_p3, %p355_p0 }
  0x13   :  { %323 = vmatprep.subr.bf16.mxu1 %v322_v26 }
  0x16   :  { %325 = vmatpush3.bf16.msra.mxu1 %v322_v26 }
  0x17   :  { %327 = vmatprep.subr.bf16.mxu1 %v326_v29 }
  0x1a   :  { %329 = vmatpush3.bf16.msra.mxu1 %v326_v29 }
  0x1b   :  { %331 = vmatprep.subr.bf16.mxu1 %v330_v32 }
  0x1e   :  { %333 = vmatpush3.bf16.msra.mxu1 %v330_v32 }
  0x1f   :  { %335 = vmatprep.subr.bf16.mxu1 %v334_v35 }
  0x22   :  { %337 = vmatpush3.bf16.msra.mxu1 %v334_v35 }
  0x23   :  { %339 = vmatprep.subr.bf16.mxu1 %v338_v38 }
  0x26   :  { %341 = vmatpush3.bf16.msra.mxu1 %v338_v38 }
  0xdf   :  { %v121_v39 = vpop.f32.mrb[0].mxu0 }
  0xe0   :  { %v247_v40 = vmul.f32 -1.442695, %v121_v39  ;;  %v123_v41 = vpop.f32.mrb[1].mxu0 }
  0xe2   :  { %346 = vpow2.f32 %v247_v40 }
  0xe3   :  { %v127_v42 = vpop.f32.mrb[2].mxu0 }
  0xe4   :  { %v248_v43 = vmul.f32 -1.442695, %v127_v42  ;;  %v129_v44 = vpop.f32.mrb[3].mxu0 }
  0xe6   :  { %348 = vpow2.f32 %v248_v43 }
  0xec   :  { %v347_v45 = vpop.eup %346 }
  0xed   :  { %v138_v46 = vadd.f32 1.0, %v347_v45 }
  0xef   :  { %350 = vrcp.f32 %v138_v46 }
  0xf0   :  { %v349_v47 = vpop.eup %348 }
  0xf1   :  { %v139_v48 = vadd.f32 1.0, %v349_v47 }
  0xf3   :  { %352 = vrcp.f32 %v139_v48 }
  0xf9   :  { %v351_v49 = vpop.eup %350 }
  0xfa   :  { %v144_v50 = vmul.f32 %v351_v49, %v121_v39 }
  0xfc   :  { %v146_v51 = vmul.f32 %v144_v50, %v123_v41 }
  0xfd   :  { %v353_v52 = vpop.eup %352 }
  0xfe   :  { %v145_v53 = vmul.f32 %v353_v52, %v127_v42  ;;  %299 = vmatprep.mubr.f32.mxu1 %v146_v51 }
 0x100   :  { %v147_v54 = vmul.f32 %v145_v53, %v129_v44 }
 0x102   :  { %300 = vmatmul.mubr.f32.vlgmr.msra.gmra.mrb[0].mxu1 %v147_v54 }
 0x1d5   :  { %v301_v57 = vpop.f32.mrb[0].mxu1 }
 0x1d6   :  { %v226_v58 = vadd.f32 %v301_v57, %v149_v55  ;;  %v216_v59 = vpop.f32.mrb[1].mxu1 }
 0x1d7   :  { %v225_v60 = vadd.f32 %v216_v59, %v148_v56 }
 0x1d8   :  { %228 = vst.msk [vmem:[#allocation2 + $0x8] sm:$0xff] %vm19_vm0, %v226_v58 }
 0x1d9   :  { %227 = vst.msk [vmem:[#allocation2] sm:$0xff] %vm19_vm0, %v225_v60 }
 0x1da   :  { %365 = shalt.err (!%p362_p4)
}
 0x1db   :  { %s366_s11 = scalar_lea.hbm %s501_s3, 256 }
 0x1dc   :  { %p367_p5 = scmp.ne.s32.totalorder %s501_s3, %s366_s11  ;;  %p370_p6 = scmp.lt.u32.totalorder %s366_s11, %s501_s3 }
 0x1de   :  { %p372_p7 = pnand %p370_p6, %p367_p5 }
 0x1e0   :  { %375 = shalt.err (!%p372_p7)
}
 0x1e1   :  { %s380_s15 = smov 128   ;;  %s381_s16 = smov 8  }
 0x1e2   :  { %240 = dma.vmem_to_hbm [thread:$0]  %s235_s7, 256, %s501_s3, [#allocation3], %s380_s15, %s380_s15, %s381_s16  }
 0x1e3   :  { %376 = dma.done.wait [#allocation3], 256  }
 0x1e4   :  { %377 = vsyncadd [#allocation3], 4294967040 }
 0x1e5   :  { %244 = vsyncpa [#allocation3], 1 }

</bundles_post_ra>
